<compile_context>
chip_gen: v7x
topology: tpu7x:2x2x1
jax: 0.10.0
libtpu: 0.0.40
codegen_flags: <defaults>
</compile_context>

<pallas_src>
import numpy as np
import jax
import jax.numpy as jnp
from jax.experimental import pallas as pl
from jax.experimental.pallas import tpu as pltpu


# ----------------------------- Pallas kernel ------------------------------ #

def gcne_kernel(x_ref, w_ref, b_ref, af_ref, ab_ref, o_ref):
    """All GCNe layers, fully unrolled, in one kernel invocation.

    x_ref  : [Np, Dp]        bf16 padded node features
    w_ref  : [L, Dp, 2*Dp]   bf16 fused per-layer weights  [W_f^T | W_b^T]
    b_ref  : [L, 1, 2*Dp]    f32  fused per-layer biases   [b_f   | b_b  ]
    af_ref : [Np, Np]        bf16 normalized forward-gate adjacency (resident)
    ab_ref : [Np, Np]        bf16 normalized backward-gate adjacency (resident)
    o_ref  : [Np, Dp]        f32  output (single lane-dense writeback)
    """
    dp = o_ref.shape[1]
    n_layers = w_ref.shape[0]

    a_f = af_ref[...]
    a_b = ab_ref[...]
    x = x_ref[...]                                   # bf16 MXU input

    act = None
    for layer in range(n_layers):                    # static, fully unrolled
        # fused lin_f|lin_b projection: one MXU pass -> f32 [Np, 2*Dp]
        xw = jnp.dot(x, w_ref[layer], preferred_element_type=jnp.float32)
        xw = xw + b_ref[layer]                       # bias add in f32

        # directed aggregation: out = A_f @ x_f + A_b @ x_b  (no concat copy;
        # dp is a multiple of 128 so both slices are lane-aligned)
        x_f = xw[:, :dp].astype(jnp.bfloat16)
        x_b = xw[:, dp:].astype(jnp.bfloat16)
        out = (jnp.dot(a_f, x_f, preferred_element_type=jnp.float32)
               + jnp.dot(a_b, x_b, preferred_element_type=jnp.float32))

        act = jnp.maximum(out, 0.0)                  # ReLU in f32
        x = act.astype(jnp.bfloat16)                 # next layer's MXU input

    o_ref[...] = act


def gcne_pallas(x_pad, w_all, b_all, a_f, a_b):
    n_layers = w_all.shape[0]
    n_p, d_p = x_pad.shape

    cost = pl.CostEstimate(
        flops=int(n_layers * (2 * n_p * d_p * (2 * d_p)        # projection
                              + 2 * (2 * n_p * n_p * d_p))),   # aggregation
        transcendentals=0,
        bytes_accessed=int(2 * (x_pad.size + w_all.size + a_f.size + a_b.size)
                           + 4 * (b_all.size + n_p * d_p)),
    )

    # No grid / BlockSpecs: every operand is whole-array resident in VMEM and
    # the kernel body runs exactly once (layers unrolled inside), eliminating
    # per-grid-step overhead which dominated at these tiny shapes.
    return pl.pallas_call(
        gcne_kernel,
        out_shape=jax.ShapeDtypeStruct((n_p, d_p), jnp.float32),
        cost_estimate=cost,
    )(x_pad, w_all, b_all, a_f, a_b)


# ------------------------------- glue (host) ------------------------------- #

def add_remaining_self_loops_np(edge_index, edge_weight, num_nodes,
                                fill_value=1.0):
    """PyG add_remaining_self_loops: drop existing self loops, append exactly
    one (i, i) per node; self-loop weight is fill_value unless the node already
    had a self loop (then its existing weight is kept)."""
    ei = np.asarray(edge_index)
    ew = np.asarray(edge_weight)
    mask = ei[0] != ei[1]
    inv = ~mask

    loop_attr = np.full((num_nodes,) + ew.shape[1:], fill_value, dtype=ew.dtype)
    if inv.any():
        loop_attr[ei[0][inv]] = ew[inv]

    loop_index = np.arange(num_nodes, dtype=ei.dtype)
    ei_out = np.concatenate([ei[:, mask], np.stack([loop_index, loop_index])],
                            axis=1)
    ew_out = np.concatenate([ew[mask], loop_attr], axis=0)
    return ei_out, ew_out


def build_norm_adjacency(edge_index, edge_weight, num_nodes, deg_axis):
    """Dense normalized adjacency A[dst, src] = sum_e d^-1/2[src]*w_e*d^-1/2[dst]
    where deg is the (unweighted) occurrence count of edge_index[deg_axis],
    matching torch_geometric.utils.degree in the reference module."""
    src = edge_index[0]
    dst = edge_index[1]
    w = edge_weight[:, 0].astype(jnp.float32)

    deg_nodes = edge_index[deg_axis]
    deg = jnp.zeros((num_nodes,), jnp.float32).at[deg_nodes].add(1.0)
    deg_inv_sqrt = jnp.where(deg > 0, deg ** -0.5, 0.0)

    norm = deg_inv_sqrt[src] * w * deg_inv_sqrt[dst]
    adj = jnp.zeros((num_nodes, num_nodes), jnp.float32).at[dst, src].add(norm)
    return adj


def _round_up(v, m):
    return ((v + m - 1) // m) * m


def gcne_forward(x, edge_index, edge_weight, params):
    """params: list of (w_f [D,D], b_f [D], w_b [D,D], b_b [D]) per layer
    (PyTorch nn.Linear layout: weight is [out, in])."""
    num_nodes, dim = x.shape
    n_layers = len(params)
    assert n_layers >= 1

    # --- edge bookkeeping (host-side O(E) glue) ---
    ei, ew = add_remaining_self_loops_np(edge_index, edge_weight, num_nodes,
                                         fill_value=1.0)
    ei = jnp.asarray(ei)
    ew = jnp.asarray(ew, dtype=jnp.float32)

    a_f = build_norm_adjacency(ei, ew, num_nodes, deg_axis=1)  # in-degree gate
    a_b = build_norm_adjacency(ei, ew, num_nodes, deg_axis=0)  # out-degree gate

    # --- pad to TPU-friendly shapes: nodes -> x16 (bf16 sublane packing),
    #     feats -> x128 lanes (lane-dense output store)
    n_p = _round_up(num_nodes, 16)
    d_p = _round_up(dim, 128)

    x_pad = (jnp.zeros((n_p, d_p), jnp.float32)
             .at[:num_nodes, :dim].set(x.astype(jnp.float32))
             .astype(jnp.bfloat16))

    a_f_p = (jnp.zeros((n_p, n_p), jnp.float32)
             .at[:num_nodes, :num_nodes].set(a_f).astype(jnp.bfloat16))
    a_b_p = (jnp.zeros((n_p, n_p), jnp.float32)
             .at[:num_nodes, :num_nodes].set(a_b).astype(jnp.bfloat16))

    # --- fused, padded per-layer weights: [L, Dp, 2*Dp] bf16 / [L, 1, 2*Dp] f32
    w_all = jnp.zeros((n_layers, d_p, 2 * d_p), jnp.float32)
    b_all = jnp.zeros((n_layers, 1, 2 * d_p), jnp.float32)
    for l, (w_f, b_f, w_b, b_b) in enumerate(params):
        w_all = w_all.at[l, :dim, :dim].set(w_f.T.astype(jnp.float32))
        w_all = w_all.at[l, :dim, d_p:d_p + dim].set(w_b.T.astype(jnp.float32))
        b_all = b_all.at[l, 0, :dim].set(b_f.astype(jnp.float32))
        b_all = b_all.at[l, 0, d_p:d_p + dim].set(b_b.astype(jnp.float32))
    w_all = w_all.astype(jnp.bfloat16)

    out_pad = gcne_pallas(x_pad, w_all, b_all, a_f_p, a_b_p)
    return out_pad[:num_nodes, :dim]


# ---------------------------------- main ----------------------------------- #

if __name__ == "__main__":
    N = 16          # number of nodes
    DIM = 32        # node feature dim (GCNe(dim=32))
    E = 40          # number of (directed) edges
    NR_LAYERS = 2   # stacked GCNeConvLayer + ReLU blocks

    key = jax.random.PRNGKey(0)
    k_x, k_src, k_dst, k_w, k_p = jax.random.split(key, 5)

    x = jax.random.normal(k_x, (N, DIM), dtype=jnp.float32)
    src = jax.random.randint(k_src, (E,), 0, N, dtype=jnp.int32)
    dst = jax.random.randint(k_dst, (E,), 0, N, dtype=jnp.int32)
    edge_index = jnp.stack([src, dst])                                # [2, E]
    edge_weight = jax.random.uniform(k_w, (E, 1), dtype=jnp.float32)  # [E, 1]

    # deterministic per-layer params: lin_f / lin_b, each [out, in] + bias [out]
    params = []
    pkeys = jax.random.split(k_p, NR_LAYERS * 4)
    bound = 1.0 / np.sqrt(DIM)
    for i in range(NR_LAYERS):
        kf_w, kf_b, kb_w, kb_b = pkeys[4 * i: 4 * i + 4]
        w_f = jax.random.uniform(kf_w, (DIM, DIM), jnp.float32, -bound, bound)
        b_f = jax.random.uniform(kf_b, (DIM,), jnp.float32, -bound, bound)
        w_b = jax.random.uniform(kb_w, (DIM, DIM), jnp.float32, -bound, bound)
        b_b = jax.random.uniform(kb_b, (DIM,), jnp.float32, -bound, bound)
        params.append((w_f, b_f, w_b, b_b))

    out = gcne_forward(x, edge_index, edge_weight, params)
    out = jax.block_until_ready(out)

    assert out.shape == (N, DIM) and out.dtype == jnp.float32
    assert bool(jnp.all(jnp.isfinite(out)))
    assert bool(jnp.all(out >= 0.0))  # ReLU output
    print("KERNEL_OK")
</pallas_src>

<mosaic_0001>
module attributes {stable_mosaic.version = 11 : i64} {
  func.func @gcne_kernel(%arg0: memref<16x128xbf16, #tpu.memory_space<vmem>>, %arg1: memref<2x128x256xbf16, #tpu.memory_space<vmem>>, %arg2: memref<2x1x256xf32, #tpu.memory_space<vmem>>, %arg3: memref<16x16xbf16, #tpu.memory_space<vmem>>, %arg4: memref<16x16xbf16, #tpu.memory_space<vmem>>, %arg5: memref<16x128xf32, #tpu.memory_space<vmem>>) attributes {dimension_semantics = [], scalar_prefetch = 0 : i64, scratch_operands = 0 : i64, tpu.core_type = #tpu.core_type<tc>} {
    %c0 = arith.constant 0 : index
    %c0_0 = arith.constant 0 : index
    %0 = vector.load %arg3[%c0, %c0_0] : memref<16x16xbf16, #tpu.memory_space<vmem>>, vector<16x16xbf16>
    %c0_1 = arith.constant 0 : index
    %c0_2 = arith.constant 0 : index
    %1 = vector.load %arg4[%c0_1, %c0_2] : memref<16x16xbf16, #tpu.memory_space<vmem>>, vector<16x16xbf16>
    %c0_3 = arith.constant 0 : index
    %c0_4 = arith.constant 0 : index
    %2 = vector.load %arg0[%c0_3, %c0_4] : memref<16x128xbf16, #tpu.memory_space<vmem>>, vector<16x128xbf16>
    %c0_5 = arith.constant 0 : index
    %c0_6 = arith.constant 0 : index
    %c0_7 = arith.constant 0 : index
    %3 = vector.load %arg1[%c0_5, %c0_6, %c0_7] : memref<2x128x256xbf16, #tpu.memory_space<vmem>>, vector<1x128x256xbf16>
    %4 = vector.shape_cast %3 : vector<1x128x256xbf16> to vector<128x256xbf16>
    %cst = arith.constant dense<0.000000e+00> : vector<16x256xf32>
    %5 = tpu.matmul %2, %4, %cst {dimension_numbers = #tpu.dot_dimension_numbers<[1], [0], [0], [1], [0, 0, 1, 1], [], []>} : vector<16x128xbf16>, vector<128x256xbf16>, vector<16x256xf32> -> vector<16x256xf32>
    %c0_8 = arith.constant 0 : index
    %c0_9 = arith.constant 0 : index
    %c0_10 = arith.constant 0 : index
    %6 = vector.load %arg2[%c0_8, %c0_9, %c0_10] : memref<2x1x256xf32, #tpu.memory_space<vmem>>, vector<1x1x256xf32>
    %7 = vector.shape_cast %6 : vector<1x1x256xf32> to vector<1x256xf32>
    %8 = vector.broadcast %7 : vector<1x256xf32> to vector<16x256xf32>
    %9 = arith.addf %5, %8 : vector<16x256xf32>
    %10 = vector.extract_strided_slice %9 {offsets = [0, 0], sizes = [16, 128], strides = [1, 1]} : vector<16x256xf32> to vector<16x128xf32>
    %11 = arith.truncf %10 : vector<16x128xf32> to vector<16x128xbf16>
    %12 = vector.extract_strided_slice %9 {offsets = [0, 128], sizes = [16, 128], strides = [1, 1]} : vector<16x256xf32> to vector<16x128xf32>
    %13 = arith.truncf %12 : vector<16x128xf32> to vector<16x128xbf16>
    %cst_11 = arith.constant dense<0.000000e+00> : vector<16x128xf32>
    %14 = tpu.matmul %0, %11, %cst_11 {dimension_numbers = #tpu.dot_dimension_numbers<[1], [0], [0], [1], [0, 0, 1, 1], [], []>} : vector<16x16xbf16>, vector<16x128xbf16>, vector<16x128xf32> -> vector<16x128xf32>
    %cst_12 = arith.constant dense<0.000000e+00> : vector<16x128xf32>
    %15 = tpu.matmul %1, %13, %cst_12 {dimension_numbers = #tpu.dot_dimension_numbers<[1], [0], [0], [1], [0, 0, 1, 1], [], []>} : vector<16x16xbf16>, vector<16x128xbf16>, vector<16x128xf32> -> vector<16x128xf32>
    %16 = arith.addf %14, %15 : vector<16x128xf32>
    %cst_13 = arith.constant 0.000000e+00 : f32
    %17 = vector.broadcast %cst_13 : f32 to vector<16x128xf32>
    %18 = arith.maximumf %16, %17 : vector<16x128xf32>
    %19 = arith.truncf %18 : vector<16x128xf32> to vector<16x128xbf16>
    %c1 = arith.constant 1 : index
    %c0_14 = arith.constant 0 : index
    %c0_15 = arith.constant 0 : index
    %20 = vector.load %arg1[%c1, %c0_14, %c0_15] : memref<2x128x256xbf16, #tpu.memory_space<vmem>>, vector<1x128x256xbf16>
    %21 = vector.shape_cast %20 : vector<1x128x256xbf16> to vector<128x256xbf16>
    %cst_16 = arith.constant dense<0.000000e+00> : vector<16x256xf32>
    %22 = tpu.matmul %19, %21, %cst_16 {dimension_numbers = #tpu.dot_dimension_numbers<[1], [0], [0], [1], [0, 0, 1, 1], [], []>} : vector<16x128xbf16>, vector<128x256xbf16>, vector<16x256xf32> -> vector<16x256xf32>
    %c1_17 = arith.constant 1 : index
    %c0_18 = arith.constant 0 : index
    %c0_19 = arith.constant 0 : index
    %23 = vector.load %arg2[%c1_17, %c0_18, %c0_19] : memref<2x1x256xf32, #tpu.memory_space<vmem>>, vector<1x1x256xf32>
    %24 = vector.shape_cast %23 : vector<1x1x256xf32> to vector<1x256xf32>
    %25 = vector.broadcast %24 : vector<1x256xf32> to vector<16x256xf32>
    %26 = arith.addf %22, %25 : vector<16x256xf32>
    %27 = vector.extract_strided_slice %26 {offsets = [0, 0], sizes = [16, 128], strides = [1, 1]} : vector<16x256xf32> to vector<16x128xf32>
    %28 = arith.truncf %27 : vector<16x128xf32> to vector<16x128xbf16>
    %29 = vector.extract_strided_slice %26 {offsets = [0, 128], sizes = [16, 128], strides = [1, 1]} : vector<16x256xf32> to vector<16x128xf32>
    %30 = arith.truncf %29 : vector<16x128xf32> to vector<16x128xbf16>
    %cst_20 = arith.constant dense<0.000000e+00> : vector<16x128xf32>
    %31 = tpu.matmul %0, %28, %cst_20 {dimension_numbers = #tpu.dot_dimension_numbers<[1], [0], [0], [1], [0, 0, 1, 1], [], []>} : vector<16x16xbf16>, vector<16x128xbf16>, vector<16x128xf32> -> vector<16x128xf32>
    %cst_21 = arith.constant dense<0.000000e+00> : vector<16x128xf32>
    %32 = tpu.matmul %1, %30, %cst_21 {dimension_numbers = #tpu.dot_dimension_numbers<[1], [0], [0], [1], [0, 0, 1, 1], [], []>} : vector<16x16xbf16>, vector<16x128xbf16>, vector<16x128xf32> -> vector<16x128xf32>
    %33 = arith.addf %31, %32 : vector<16x128xf32>
    %cst_22 = arith.constant 0.000000e+00 : f32
    %34 = vector.broadcast %cst_22 : f32 to vector<16x128xf32>
    %35 = arith.maximumf %33, %34 : vector<16x128xf32>
    %c0_23 = arith.constant 0 : index
    %c0_24 = arith.constant 0 : index
    %36 = vector.load %arg5[%c0_23, %c0_24] : memref<16x128xf32, #tpu.memory_space<vmem>>, vector<16x128xf32>
    tpu.vector_store %arg5[%c0_23, %c0_24], %35 {strides = array<i32>} : memref<16x128xf32, #tpu.memory_space<vmem>>, vector<16x128xf32>,
    return
  }
}

</mosaic_0001>

<bundles_post_ra>
// kernel: tpu_custom_call.1
= control target key start
LH: loop header
LB: loop body
LE: loop exit
PB: predicated region body
PF: predicated region fallthrough
CT: control target
= control target key end

     0   :  { %10 = vsyncpa [#allocation3], 0  ;;  %s1019_s0 = inlined_call_operand.hbm [shape: bf16[16,128], index: 0, kind: input, shape index: {}]   ;;  %s1020_s1 = inlined_call_operand.hbm [shape: bf16[2,128,256], index: 1, kind: input, shape index: {}]   ;;  %s1021_s2 = inlined_call_operand.hbm [shape: f32[2,1,256], index: 2, kind: input, shape index: {}]   ;;  %s1022_s3 = inlined_call_operand.vmem [shape: bf16[16,16], index: 3, kind: input, shape index: {}]   ;;  %s1023_s4 = inlined_call_operand.hbm [shape: bf16[16,16], index: 4, kind: input, shape index: {}]   ;;  %s1024_s5 = inlined_call_operand.hbm [shape: f32[16,128], index: 5, kind: output, shape index: {}]  }
   0x1   :  { %11 = vsyncpa [#allocation6], 0 }
   0x2   :  { %12 = vsyncpa [#allocation9], 0 }
   0x3   :  { %13 = vsyncpa [#allocation4], 0  ;;  %s866_s18 = smov [#allocation5]   ;;  %s748_s22 = scalar_lea.hbm %s1020_s1, 4096 }
   0x4   :  { %s31_s19 = sshll.u32 %s866_s18, 4  ;;  %p749_p0 = scmp.ne.s32.totalorder %s1020_s1, %s748_s22  ;;  %s32_s19 = int_to_ptr.vmem [resolvable:$true] %s31_s19 }
   0x5   :  { %p752_p1 = scmp.lt.u32.totalorder %s748_s22, %s1020_s1 }
   0x7   :  { %p754_p2 = pnand %p752_p1, %p749_p0 }
   0x9   :  { %757 = shalt.err (!%p754_p2)
}
   0xa   :  { %s758_s27 = scalar_lea.vmem %s32_s19, 4096  ;;  %p763_p4 = scmp.lt.s32.totalorder %s32_s19, %s32_s19 }
   0xb   :  { %p759_p3 = scmp.ne.s32.totalorder %s32_s19, %s758_s27  ;;  %p764_p5 = scmp.lt.s32.totalorder %s758_s27, %s758_s27 }
   0xd   :  { %p765_p6 = por %p764_p5, %p763_p4 }
   0xf   :  { %p766_p7 = pnand %p765_p6, %p759_p3 }
  0x11   :  { %769 = shalt.err (!%p766_p7)
}
  0x12   :  { %s867_s28 = smov 128   ;;  %s868_s29 = smov 8  }
  0x13   :  { %37 = dma.hbm_to_vmem [thread:$0]  %s1020_s1, 4096, %s32_s19, [#allocation6], %s867_s28, %s867_s28, %s868_s29  }
  0x14   :  { %s869_s7 = smov [#allocation2]   ;;  %s770_s11 = scalar_lea.hbm %s1019_s0, 128 }
  0x15   :  { %s19_s8 = sshll.u32 %s869_s7, 4  ;;  %p771_p8 = scmp.ne.s32.totalorder %s1019_s0, %s770_s11  ;;  %s20_s8 = int_to_ptr.vmem [resolvable:$true] %s19_s8 }
  0x16   :  { %p774_p9 = scmp.lt.u32.totalorder %s770_s11, %s1019_s0 }
  0x18   :  { %p776_p10 = pnand %p774_p9, %p771_p8 }
  0x1a   :  { %779 = shalt.err (!%p776_p10)
}
  0x1b   :  { %s780_s16 = scalar_lea.vmem %s20_s8, 128  ;;  %p785_p12 = scmp.lt.s32.totalorder %s20_s8, %s20_s8 }
  0x1c   :  { %p781_p11 = scmp.ne.s32.totalorder %s20_s8, %s780_s16  ;;  %p786_p13 = scmp.lt.s32.totalorder %s780_s16, %s780_s16 }
  0x1e   :  { %p787_p0 = por %p786_p13, %p785_p12 }
  0x20   :  { %p788_p1 = pnand %p787_p0, %p781_p11 }
  0x22   :  { %791 = shalt.err (!%p788_p1)
}
  0x23   :  { %s870_s1 = smov 64   ;;  %s871_s17 = smov 4  }
  0x24   :  { %25 = dma.hbm_to_vmem [thread:$0]  %s1019_s0, 128, %s20_s8, [#allocation3], %s870_s1, %s870_s1, %s871_s17  }
  0x25   :  { %s872_s20 = smov [#allocation7]   ;;  %s792_s24 = scalar_lea.hbm %s1021_s2, 64 }
  0x26   :  { %s43_s21 = sshll.u32 %s872_s20, 4  ;;  %p793_p2 = scmp.ne.s32.totalorder %s1021_s2, %s792_s24  ;;  %s44_s21 = int_to_ptr.vmem [resolvable:$true] %s43_s21 }
  0x27   :  { %p796_p3 = scmp.lt.u32.totalorder %s792_s24, %s1021_s2 }
  0x29   :  { %p798_p4 = pnand %p796_p3, %p793_p2 }
  0x2b   :  { %801 = shalt.err (!%p798_p4)
}
  0x2c   :  { %s802_s6 = scalar_lea.vmem %s44_s21, 64  ;;  %p807_p6 = scmp.lt.s32.totalorder %s44_s21, %s44_s21 }
  0x2d   :  { %p803_p5 = scmp.ne.s32.totalorder %s44_s21, %s802_s6  ;;  %p808_p7 = scmp.lt.s32.totalorder %s802_s6, %s802_s6 }
  0x2f   :  { %p809_p8 = por %p808_p7, %p807_p6 }
  0x31   :  { %p810_p9 = pnand %p809_p8, %p803_p5 }
  0x33   :  { %813 = shalt.err (!%p810_p9)
}
  0x34   :  { %s873_s0 = smov 32   ;;  %s874_s7 = smov 2  }
  0x35   :  { %49 = dma.hbm_to_vmem [thread:$0]  %s1021_s2, 64, %s44_s21, [#allocation6], %s873_s0, %s873_s0, %s874_s7  }
  0x36   :  { %s875_s10 = smov [#allocation8]   ;;  %s814_s14 = scalar_lea.hbm %s1023_s4, 128 }
  0x37   :  { %s57_s11 = sshll.u32 %s875_s10, 4  ;;  %p815_p10 = scmp.ne.s32.totalorder %s1023_s4, %s814_s14  ;;  %s58_s11 = int_to_ptr.vmem [resolvable:$true] %s57_s11 }
  0x38   :  { %p818_p11 = scmp.lt.u32.totalorder %s814_s14, %s1023_s4 }
  0x3a   :  { %p820_p12 = pnand %p818_p11, %p815_p10 }
  0x3c   :  { %823 = shalt.err (!%p820_p12)
}
  0x3d   :  { %s824_s20 = scalar_lea.vmem %s58_s11, 128  ;;  %p829_p0 = scmp.lt.s32.totalorder %s58_s11, %s58_s11 }
  0x3e   :  { %p825_p13 = scmp.ne.s32.totalorder %s58_s11, %s824_s20  ;;  %p830_p1 = scmp.lt.s32.totalorder %s824_s20, %s824_s20 }
  0x40   :  { %p831_p2 = por %p830_p1, %p829_p0 }
  0x42   :  { %p832_p3 = pnand %p831_p2, %p825_p13 }
  0x44   :  { %835 = shalt.err (!%p832_p3)
}
  0x45   :  { %63 = dma.hbm_to_vmem [thread:$0]  %s1023_s4, 128, %s58_s11, [#allocation9], %s870_s1, %s870_s1, %s871_s17  }
  0x46   :  { %858 = dma.done.wait [#allocation3], 128  }
  0x47   :  { %859 = vsyncadd [#allocation3], 4294967168 }
  0x48   :  { %860 = dma.done.wait [#allocation6], 4160  }
  0x49   :  { %861 = vsyncadd [#allocation6], 4294963136 }
  0x4a   :  { %862 = dma.done.wait [#allocation9], 128  }
  0x4b   :  { %863 = vsyncadd [#allocation9], 4294967168  ;;  %v876_v0 = vmov 0   ;;  %v697_v1 = vld [vmem:[#allocation5 + $0x4] ss:$8 sps:$4 sm:$0xff]   ;;  %v721_v17 = vld [vmem:[#allocation2] sm:$0xff]   ;;  %v101_v19 = vlaneseq }
  0x4c   :  { %229 = vmatprep.mubr.bf16.mxu0 %v876_v0  ;;  %v699_v2 = vld [vmem:[#allocation5] ss:$8 sps:$4 sm:$0xff]   ;;  %197 = vmatprep.subr.bf16.mxu0 %v697_v1  ;;  %v700_v3 = vld [vmem:[#allocation5 + $0x14] ss:$8 sps:$4 sm:$0xff]   ;;  %v702_v4 = vld [vmem:[#allocation5 + $0x10] ss:$8 sps:$4 sm:$0xff]  }
  0x4d   :  { %198 = vmatpush1.bf16.msra.mxu0 %v699_v2  ;;  %v703_v5 = vld [vmem:[#allocation5 + $0x24] ss:$8 sps:$4 sm:$0xff]   ;;  %v705_v6 = vld [vmem:[#allocation5 + $0x20] ss:$8 sps:$4 sm:$0xff]   ;;  %v706_v7 = vld [vmem:[#allocation5 + $0x34] ss:$8 sps:$4 sm:$0xff]  }
  0x4e   :  { %199 = vmatprep.subr.bf16.mxu0 %v700_v3  ;;  %v708_v8 = vld [vmem:[#allocation5 + $0x30] ss:$8 sps:$4 sm:$0xff]   ;;  %v709_v9 = vld [vmem:[#allocation5 + $0x44] ss:$8 sps:$4 sm:$0xff]   ;;  %v711_v10 = vld [vmem:[#allocation5 + $0x40] ss:$8 sps:$4 sm:$0xff]  }
  0x4f   :  { %v712_v11 = vld [vmem:[#allocation5 + $0x54] ss:$8 sps:$4 sm:$0xff]   ;;  %v714_v12 = vld [vmem:[#allocation5 + $0x50] ss:$8 sps:$4 sm:$0xff]   ;;  %v715_v13 = vld [vmem:[#allocation5 + $0x64] ss:$8 sps:$4 sm:$0xff]  }
  0x50   :  { %v717_v14 = vld [vmem:[#allocation5 + $0x60] ss:$8 sps:$4 sm:$0xff]   ;;  %v718_v15 = vld [vmem:[#allocation5 + $0x74] ss:$8 sps:$4 sm:$0xff]   ;;  %v720_v16 = vld [vmem:[#allocation5 + $0x70] ss:$8 sps:$4 sm:$0xff]  }
  0x51   :  { %200 = vmatpush1.bf16.msra.mxu0 %v702_v4  ;;  %v877_v18 = vmov 0.0   ;;  %vm878_vm0 = vmmov 0   ;;  %v974_v20 = vshrl.u32 %v101_v19, 7  ;;  %v99_v22 = vld [vmem:[#allocation7] sm:$0x3]  ;;  %v982_v36 = vld [vmem:[#allocation8] sm:$0xff]  }
  0x52   :  { %201 = vmatprep.subr.bf16.mxu0 %v703_v5  ;;  %651 = vmatprep.subr.bf16.mxu1 %v877_v18  ;;  %vm247_vm1 = vcmask 130048   ;;  %v726_v37 = vld [vmem:[#allocation5 + $0x84] ss:$8 sps:$4 sm:$0xff]   ;;  %v723_v38 = vld [vmem:[%s1022_s3] sm:$0xff]   ;;  %v724_v39 = vld [vmem:[#allocation5 + $0x80] ss:$8 sps:$4 sm:$0xff]  }
  0x53   :  { %653 = vmatprep.mubr.msk.bf16.mxu1 %vm878_vm0, %v877_v18  ;;  %v103_v21 = vsub.s32 0, %v974_v20  ;;  %v107_v23 = vsub.s32 1, %v974_v20  ;;  %v729_v40 = vld [vmem:[#allocation5 + $0x94] ss:$8 sps:$4 sm:$0xff]   ;;  %v727_v41 = vld [vmem:[#allocation5 + $0x90] ss:$8 sps:$4 sm:$0xff]  }
  0x54   :  { %v732_v42 = vld [vmem:[#allocation5 + $0xa4] ss:$8 sps:$4 sm:$0xff]   ;;  %v730_v43 = vld [vmem:[#allocation5 + $0xa0] ss:$8 sps:$4 sm:$0xff]   ;;  %v735_v44 = vld [vmem:[#allocation5 + $0xb4] ss:$8 sps:$4 sm:$0xff]  }
  0x55   :  { %202 = vmatpush1.bf16.msra.mxu0 %v705_v6  ;;  %v104_v24 = vrot.slane %v99_v22, %v103_v21  ;;  %v108_v26 = vrot.slane %v99_v22, %v107_v23  ;;  %v733_v45 = vld [vmem:[#allocation5 + $0xb0] ss:$8 sps:$4 sm:$0xff]   ;;  %v738_v46 = vld [vmem:[#allocation5 + $0xc4] ss:$8 sps:$4 sm:$0xff]   ;;  %v736_v47 = vld [vmem:[#allocation5 + $0xc0] ss:$8 sps:$4 sm:$0xff]  }
  0x56   :  { %203 = vmatprep.subr.bf16.mxu0 %v706_v7  ;;  %v741_v48 = vld [vmem:[#allocation5 + $0xd4] ss:$8 sps:$4 sm:$0xff]   ;;  %v739_v49 = vld [vmem:[#allocation5 + $0xd0] ss:$8 sps:$4 sm:$0xff]   ;;  %v744_v50 = vld [vmem:[#allocation5 + $0xe4] ss:$8 sps:$4 sm:$0xff]  }
  0x57   :  { %v742_v51 = vld [vmem:[#allocation5 + $0xe0] ss:$8 sps:$4 sm:$0xff]   ;;  %v747_v52 = vld [vmem:[#allocation5 + $0xf4] ss:$8 sps:$4 sm:$0xff]   ;;  %v745_v53 = vld [vmem:[#allocation5 + $0xf0] ss:$8 sps:$4 sm:$0xff]  }
  0x58   :  { %v362_v61 = vld [vmem:[#allocation7 + $0x2] sm:$0x3]  ;;  %s879_s3 = smov [#allocation10]  }
  0x59   :  { %204 = vmatpush1.bf16.msra.mxu0 %v708_v8  ;;  %v367_v62 = vrot.slane %v362_v61, %v103_v21  ;;  %s590_s17 = sshll.u32 %s879_s3, 4  ;;  %s591_s17 = int_to_ptr.vmem [resolvable:$true] %s590_s17 }
  0x5a   :  { %205 = vmatprep.subr.bf16.mxu0 %v709_v9  ;;  %s836_s22 = scalar_lea.vmem %s591_s17, 256  ;;  %p841_p5 = scmp.lt.s32.totalorder %s591_s17, %s591_s17 }
  0x5b   :  { %p837_p4 = scmp.ne.s32.totalorder %s591_s17, %s836_s22  ;;  %p842_p6 = scmp.lt.s32.totalorder %s836_s22, %s836_s22 }
  0x5d   :  { %206 = vmatpush1.bf16.msra.mxu0 %v711_v10  ;;  %p843_p7 = por %p842_p6, %p841_p5 }
  0x5e   :  { %207 = vmatprep.subr.bf16.mxu0 %v712_v11 }
  0x5f   :  { %p844_p8 = pnand %p843_p7, %p837_p4 }
  0x61   :  { %208 = vmatpush1.bf16.msra.mxu0 %v714_v12 }
  0x62   :  { %209 = vmatprep.subr.bf16.mxu0 %v715_v13 }
  0x65   :  { %210 = vmatpush1.bf16.msra.mxu0 %v717_v14 }
  0x66   :  { %211 = vmatprep.subr.bf16.mxu0 %v718_v15 }
  0x69   :  { %212 = vmatpush1.bf16.msra.mxu0 %v720_v16 }
  0x6a   :  { %663 = vmatprep.subr.bf16.mxu0 %v877_v18 }
  0x6c   :  { %230 = vmatmul.mubr.bf16.vlgmr.msra.gmra.mrb[0].mxu0 %v721_v17 }
  0x6d   :  { %665 = vmatprep.mubr.msk.bf16.mxu0 %vm878_vm0, %v877_v18 }
 0x13f   :  { %v231_v25 = vpop.f32.mrb[0].mxu0 }
 0x140   :  { %v233_v27 = vpop.f32.mrb[1].mxu0  ;;  %v232_v29 = vadd.f32 %v231_v25, %v104_v24 }
 0x141   :  { %v235_v28 = vpop.f32.mrb[2].mxu0  ;;  %v234_v32 = vadd.f32 %v233_v27, %v108_v26 }
 0x142   :  { %v236_v30 = vadd.f32 %v235_v28, %v104_v24  ;;  %v237_v31 = vpop.f32.mrb[3].mxu0 }
 0x143   :  { %v238_v33 = vadd.f32 %v237_v31, %v108_v26 }
 0x144   :  { %v240_v34 = vpack.c.bf16 %v236_v30, %v232_v29 }
 0x145   :  { %v241_v35 = vpack.c.bf16 %v238_v33, %v234_v32 }
 0x147   :  { %652 = vmatpush3.bf16.msra.mxu1 %v241_v35 }
 0x148   :  { %657 = vmatprep.subr.bf16.mxu1 %v877_v18 }
 0x14a   :  { %654 = vmatmul.mubr.msk.bf16.vlgmr.msra.gmra.mrb[0].mxu1 %vm247_vm1, %v982_v36 }
 0x14b   :  { %658 = vmatpush3.bf16.msra.mxu1 %v240_v34  ;;  %659 = vmatprep.mubr.msk.bf16.mxu1 %vm878_vm0, %v877_v18 }
 0x14c   :  { %454 = vmatprep.subr.bf16.mxu1 %v726_v37 }
 0x156   :  { %660 = vmatmul.mubr.msk.bf16.vlgmr.msra.gmra.mrb[0].mxu1 %vm247_vm1, %v723_v38 }
 0x157   :  { %455 = vmatpush1.bf16.msra.mxu1 %v724_v39  ;;  %486 = vmatprep.mubr.bf16.mxu1 %v876_v0  ;;  %v371_v0 = vrot.slane %v362_v61, %v107_v23 }
 0x158   :  { %456 = vmatprep.subr.bf16.mxu1 %v729_v40 }
 0x15b   :  { %457 = vmatpush1.bf16.msra.mxu1 %v727_v41 }
 0x15c   :  { %458 = vmatprep.subr.bf16.mxu1 %v732_v42 }
 0x15f   :  { %459 = vmatpush1.bf16.msra.mxu1 %v730_v43 }
 0x160   :  { %460 = vmatprep.subr.bf16.mxu1 %v735_v44 }
 0x163   :  { %461 = vmatpush1.bf16.msra.mxu1 %v733_v45 }
 0x164   :  { %462 = vmatprep.subr.bf16.mxu1 %v738_v46 }
 0x167   :  { %463 = vmatpush1.bf16.msra.mxu1 %v736_v47 }
 0x168   :  { %464 = vmatprep.subr.bf16.mxu1 %v741_v48 }
 0x16b   :  { %465 = vmatpush1.bf16.msra.mxu1 %v739_v49 }
 0x16c   :  { %466 = vmatprep.subr.bf16.mxu1 %v744_v50 }
 0x16f   :  { %467 = vmatpush1.bf16.msra.mxu1 %v742_v51 }
 0x170   :  { %468 = vmatprep.subr.bf16.mxu1 %v747_v52 }
 0x173   :  { %469 = vmatpush1.bf16.msra.mxu1 %v745_v53 }
 0x229   :  { %v334_v54 = vpop.f32.mrb[0].mxu1 }
 0x22a   :  { %v661_v55 = vpop.f32.mrb[1].mxu1  ;;  %v341_v57 = vmax.f32 %v334_v54, 0.0 }
 0x22b   :  { %v337_v56 = vpop.f32.mrb[2].mxu1 }
 0x22c   :  { %v342_v58 = vmax.f32 %v337_v56, 0.0  ;;  %v662_v59 = vpop.f32.mrb[3].mxu1 }
 0x22e   :  { %v343_v60 = vpack.c.bf16 %v342_v58, %v341_v57 }
 0x230   :  { %487 = vmatmul.mubr.bf16.vlgmr.msra.gmra.mrb[4].mxu1 %v343_v60 }
 0x303   :  { %v488_v63 = vpop.f32.mrb[4].mxu1 }
 0x304   :  { %v490_v1 = vpop.f32.mrb[5].mxu1  ;;  %v489_v3 = vadd.f32 %v488_v63, %v367_v62 }
 0x305   :  { %v492_v2 = vpop.f32.mrb[6].mxu1  ;;  %v491_v6 = vadd.f32 %v490_v1, %v371_v0 }
 0x306   :  { %v493_v4 = vadd.f32 %v492_v2, %v367_v62  ;;  %v494_v5 = vpop.f32.mrb[7].mxu1 }
 0x307   :  { %v495_v7 = vadd.f32 %v494_v5, %v371_v0 }
 0x308   :  { %v497_v8 = vpack.c.bf16 %v493_v4, %v489_v3 }
 0x309   :  { %v498_v9 = vpack.c.bf16 %v495_v7, %v491_v6 }
 0x30b   :  { %664 = vmatpush3.bf16.msra.mxu0 %v498_v9 }
 0x30c   :  { %669 = vmatprep.subr.bf16.mxu0 %v877_v18 }
 0x30e   :  { %666 = vmatmul.mubr.msk.bf16.vlgmr.msra.gmra.mrb[4].mxu0 %vm247_vm1, %v982_v36 }
 0x30f   :  { %670 = vmatpush3.bf16.msra.mxu0 %v497_v8  ;;  %671 = vmatprep.mubr.msk.bf16.mxu0 %vm878_vm0, %v877_v18 }
 0x31a   :  { %672 = vmatmul.mubr.msk.bf16.vlgmr.msra.gmra.mrb[4].mxu0 %vm247_vm1, %v723_v38 }
 0x3ed   :  { %v574_v10 = vpop.f32.mrb[4].mxu0 }
 0x3ee   :  { %v581_v11 = vmax.f32 %v574_v10, 0.0  ;;  %v673_v12 = vpop.f32.mrb[5].mxu0 }
 0x3ef   :  { %v577_v13 = vpop.f32.mrb[6].mxu0 }
 0x3f0   :  { %583 = vst [vmem:[#allocation10] sm:$0xff] %v581_v11  ;;  %v582_v14 = vmax.f32 %v577_v13, 0.0  ;;  %v674_v15 = vpop.f32.mrb[7].mxu0 }
 0x3f2   :  { %584 = vst [vmem:[#allocation10 + $0x8] sm:$0xff] %v582_v14 }
 0x3f3   :  { %847 = shalt.err (!%p844_p8)
}
 0x3f4   :  { %s848_s25 = scalar_lea.hbm %s1024_s5, 256 }
 0x3f5   :  { %p849_p9 = scmp.ne.s32.totalorder %s1024_s5, %s848_s25  ;;  %p852_p10 = scmp.lt.u32.totalorder %s848_s25, %s1024_s5 }
 0x3f7   :  { %p854_p11 = pnand %p852_p10, %p849_p9 }
 0x3f9   :  { %857 = shalt.err (!%p854_p11)
}
 0x3fa   :  { %596 = dma.vmem_to_hbm [thread:$0]  %s591_s17, 256, %s1024_s5, [#allocation4], %s867_s28, %s867_s28, %s868_s29  }
 0x3fb   :  { %864 = dma.done.wait [#allocation4], 256  }
 0x3fc   :  { %865 = vsyncadd [#allocation4], 4294967040 }
 0x3fd   :  { %600 = vsyncpa [#allocation3], 1 }
 0x3fe   :  { %601 = vsyncpa [#allocation6], 1 }
 0x3ff   :  { %602 = vsyncpa [#allocation9], 1 }
 0x400   :  { %603 = vsyncpa [#allocation4], 1 }

</bundles_post_ra>
